<compile_context>
chip_gen: v6e
topology: v6e:2x2x1
jax: 0.10.0
libtpu: 0.0.40
codegen_flags: <defaults>
</compile_context>

<pallas_src>
import jax
import jax.numpy as jnp
from jax.experimental import pallas as pl
from jax.experimental.pallas import tpu as pltpu


def _laa_kernel(q_ref, psT_ref, awc_ref, mb_ref, src_ref,
                wq_ref, wconv_ref, wloc_ref, wv_ref,
                ctx_ref, aw_ref):
    f32 = jnp.float32
    bt = psT_ref.shape[0]          # batch rows per grid step (static)

    wq = wq_ref[...]               # (A, R)
    wconv = wconv_ref[...]         # (F, 2K_pad)
    wloc = wloc_ref[...]           # (A, F)
    wv = wv_ref[...]               # (1, A)

    for b in range(bt):            # static unroll over the batch tile
        # processed_query, attn-dim-major: (A, R) @ (R, 1) -> (A, 1)
        pq = jnp.dot(wq, q_ref[b], preferred_element_type=f32)
        # location conv1d fused over all taps/channels: (F, 2K) @ (2K, Tp) -> (F, Tp)
        loc = jnp.dot(wconv, awc_ref[b], preferred_element_type=f32)
        # location dense (no bias): (A, F) @ (F, Tp) -> (A, Tp)
        pa = jnp.dot(wloc, loc, preferred_element_type=f32)
        # e_{a,t} = tanh(W s_{i-1} + V h_t + U f_t)
        e = jnp.tanh(pq + psT_ref[b].astype(f32) + pa)                      # (A, Tp)
        # energies + (v-bias & additive mask folded into mb): (1, A) @ (A, Tp) -> (1, Tp)
        en = jnp.dot(wv, e, preferred_element_type=f32) + mb_ref[b]
        # numerically-stable softmax over the lane-dense encoder axis
        m = jnp.max(en, axis=-1, keepdims=True)
        ex = jnp.exp(en - m)
        w = ex * pl.reciprocal(jnp.sum(ex, axis=-1, keepdims=True), approx=True)
        aw_ref[b] = w
        # attention context: (1, Tp) @ (Tp, Ep) -> (1, Ep)
        ctx_ref[b] = jnp.dot(w.astype(src_ref.dtype), src_ref[b],
                             preferred_element_type=f32).astype(ctx_ref.dtype)


def _round_up(x, m):
    return ((x + m - 1) // m) * m


def location_aware_attention(query, source, processed_source_t, attn_weights_cat,
                             source_mask, params, *, block_batch=None):
    """Forward pass of LocationAwareAttention.

    Args:
      query:              (B, R)      attention-RNN hidden state.
      source:             (B, T, E)   encoder outputs.
      processed_source_t: (B, A, T)   source_layer(source), attn-dim-major.
      attn_weights_cat:   (B, 2, T)   [prev attention weights; cumulated weights].
      source_mask:        (B, T) bool True = valid encoder position.
      params: Wq (A,R), Wconv (F,2,K), Wloc (A,F), Wv (1,A), bv (1,).
    Returns:
      attention_context (B, E) f32, attention_weights (B, T) f32.
    """
    Wq, Wconv, Wloc, Wv, bv = (params["Wq"], params["Wconv"], params["Wloc"],
                               params["Wv"], params["bv"])
    B, T, E = source.shape
    A, R = Wq.shape
    F, C, K = Wconv.shape
    assert K % 2 == 1, "'same' conv padding below assumes an odd kernel size"
    pad = (K - 1) // 2

    f32, bf16 = jnp.float32, jnp.bfloat16
    LANE, SUB = 128, 8
    Tp = _round_up(T, LANE)          # lane-dense encoder axis
    Ep = _round_up(E, LANE)          # lane-dense context axis
    K2 = C * K
    K2p = _round_up(K2, SUB)         # aligned conv-contraction axis

    # ---- layout plumbing only (no module compute is hoisted out of the kernel) ----
    q_col = query.astype(f32)[:, :, None]                                   # (B, R, 1)
    psT = jnp.pad(processed_source_t.astype(bf16),
                  ((0, 0), (0, 0), (0, Tp - T)))                            # (B, A, Tp)
    # im2col of the 'same'-padded attention-weight history -> (B, 2K, Tp)
    awc_pad = jnp.pad(attn_weights_cat.astype(f32), ((0, 0), (0, 0), (pad, pad)))
    cols = jnp.stack([awc_pad[:, :, k:k + T] for k in range(K)], axis=2)    # (B, 2, K, T)
    awc_i2c = jnp.pad(cols.reshape(B, K2, T),
                      ((0, 0), (0, K2p - K2), (0, Tp - T)))                 # (B, K2p, Tp)
    # additive mask with the v-bias folded in (the bias cancels in softmax but is kept for
    # energy fidelity); padded encoder positions are masked as well.
    mb = jnp.where(source_mask, bv.astype(f32)[0], jnp.float32(-1e30))[:, None, :]
    mb = jnp.pad(mb, ((0, 0), (0, 0), (0, Tp - T)), constant_values=-1e30)  # (B, 1, Tp)
    src = jnp.pad(source.astype(bf16), ((0, 0), (0, Tp - T), (0, Ep - E)))  # (B, Tp, Ep)
    wq = Wq.astype(f32)                                                     # (A, R)
    wconv_flat = jnp.pad(Wconv.astype(f32).reshape(F, K2), ((0, 0), (0, K2p - K2)))
    wloc = Wloc.astype(f32)                                                 # (A, F)
    wv = Wv.astype(f32)                                                     # (1, A)

    # ---- batch tile: amortize per-grid-step overhead while staying inside a conservative
    #      VMEM budget (v5e default scoped = 16 MiB, v7x physical = 64 MiB) ----
    per_row_bytes = (R * 4                   # query column (f32)
                     + A * Tp * 2            # processed_source^T (bf16)
                     + K2p * Tp * 4          # im2col'd weight history (f32)
                     + Tp * 4                # additive mask (f32)
                     + Tp * Ep * 2           # source (bf16)
                     + Ep * 4 + Tp * 4)      # context + weight outputs (f32)
    weight_bytes = (A * R + F * K2p + A * F + A) * 4
    budget = 16 * 1024 * 1024
    bt = max(1, min(B, 8, budget // (2 * per_row_bytes)))
    if block_batch is not None:
        bt = max(1, min(B, int(block_batch)))
    if B > 1 and bt >= B:
        bt = (B + 1) // 2                    # keep >= 2 grid steps (v7x: 2 TCs/chip)
    while B % bt:                            # avoid a ragged final block
        bt -= 1
    grid = (B // bt,)

    vmem_need = 2 * bt * per_row_bytes + 2 * weight_bytes
    vmem_limit = int(min(max(4 * vmem_need, 8 * 1024 * 1024), 48 * 1024 * 1024))

    ctx_p, aw_p = pl.pallas_call(
        _laa_kernel,
        out_shape=(jax.ShapeDtypeStruct((B, 1, Ep), f32),
                   jax.ShapeDtypeStruct((B, 1, Tp), f32)),
        grid_spec=pltpu.PrefetchScalarGridSpec(
            num_scalar_prefetch=0,
            grid=grid,
            in_specs=[
                pl.BlockSpec((bt, R, 1), lambda i: (i, 0, 0)),      # query column
                pl.BlockSpec((bt, A, Tp), lambda i: (i, 0, 0)),     # processed_source^T
                pl.BlockSpec((bt, K2p, Tp), lambda i: (i, 0, 0)),   # im2col weight history
                pl.BlockSpec((bt, 1, Tp), lambda i: (i, 0, 0)),     # additive mask (+bias)
                pl.BlockSpec((bt, Tp, Ep), lambda i: (i, 0, 0)),    # source
                pl.BlockSpec((A, R), lambda i: (0, 0)),             # Wq
                pl.BlockSpec((F, K2p), lambda i: (0, 0)),           # Wconv, flattened
                pl.BlockSpec((A, F), lambda i: (0, 0)),             # Wloc
                pl.BlockSpec((1, A), lambda i: (0, 0)),             # Wv
            ],
            out_specs=[
                pl.BlockSpec((bt, 1, Ep), lambda i: (i, 0, 0)),     # context
                pl.BlockSpec((bt, 1, Tp), lambda i: (i, 0, 0)),     # attention weights
            ],
        ),
        compiler_params=pltpu.CompilerParams(
            dimension_semantics=("parallel",),
            vmem_limit_bytes=vmem_limit),
    )(q_col, psT, awc_i2c, mb, src, wq, wconv_flat, wloc, wv)

    return ctx_p[:, 0, :E], aw_p[:, 0, :T]


# ---------------- reference (plain JAX, f32 / highest precision) ----------------
def reference(query, source, processed_source_t, attn_weights_cat, source_mask, params):
    Wq, Wconv, Wloc, Wv, bv = (params["Wq"], params["Wconv"], params["Wloc"],
                               params["Wv"], params["bv"])
    F_, _, K = Wconv.shape
    B = query.shape[0]
    T = attn_weights_cat.shape[2]
    pad = (K - 1) // 2
    with jax.default_matmul_precision("float32"):
        pq = jnp.einsum('br,ar->ba', query, Wq)                           # (B, A)
        xp = jnp.pad(attn_weights_cat, ((0, 0), (0, 0), (pad, pad)))
        loc = jnp.zeros((B, F_, T), jnp.float32)
        for k in range(K):
            loc = loc + jnp.einsum('fc,bct->bft', Wconv[:, :, k], xp[:, :, k:k + T])
        pa = jnp.einsum('af,bft->bat', Wloc, loc)                         # (B, A, T)
        e = jnp.tanh(pq[:, :, None] + processed_source_t + pa)            # (B, A, T)
        en = jnp.einsum('a,bat->bt', Wv[0], e) + bv[0]                    # (B, T)
        en = jnp.where(source_mask, en, -jnp.inf)
        w = jax.nn.softmax(en, axis=-1)
        ctx = jnp.einsum('bt,bte->be', w, source)
    return ctx, w


def xavier_uniform(key, shape, gain=1.0):
    fan_out, fan_in = shape
    a = gain * jnp.sqrt(6.0 / (fan_in + fan_out))
    return jax.random.uniform(key, shape, jnp.float32, -a, a)


if __name__ == "__main__":
    B, T = 4, 16            # batch, encoder length
    R, A, E = 32, 16, 32    # attn_rnn_dim, attn_dim, encoder_dim
    F, K = 32, 31           # location filters / kernel size

    keys = jax.random.split(jax.random.PRNGKey(0), 10)
    tanh_gain = 5.0 / 3.0

    Wq = xavier_uniform(keys[0], (A, R), tanh_gain)                   # query_layer
    Ws = xavier_uniform(keys[1], (A, E), tanh_gain)                   # source_layer
    Wv = xavier_uniform(keys[2], (1, A), 1.0)                         # v weight
    bv = jax.random.uniform(keys[3], (1,), jnp.float32,
                            -1.0 / jnp.sqrt(A), 1.0 / jnp.sqrt(A))    # v bias
    Wconv = jax.random.uniform(keys[4], (F, 2, K), jnp.float32,
                               -1.0 / jnp.sqrt(2 * K), 1.0 / jnp.sqrt(2 * K))
    Wloc = xavier_uniform(keys[5], (A, F), tanh_gain)                 # location_dense

    query = jax.random.normal(keys[6], (B, R), jnp.float32)
    source = jax.random.normal(keys[7], (B, T, E), jnp.float32)
    attn_weights_cat = jax.random.uniform(keys[8], (B, 2, T), jnp.float32)
    lengths = jnp.array([T, 12, 9, T])
    source_mask = jnp.arange(T)[None, :] < lengths[:, None]           # (B, T) bool

    # preprocess_source_inputs, produced directly attn-dim-major (B, A, T) upstream
    processed_source_t = jnp.einsum('bte,ae->bat', source, Ws,
                                    precision=jax.lax.Precision.HIGHEST)

    params = dict(Wq=Wq, Wconv=Wconv, Wloc=Wloc, Wv=Wv, bv=bv)

    ctx, aw = location_aware_attention(query, source, processed_source_t,
                                       attn_weights_cat, source_mask, params)
    jax.block_until_ready((ctx, aw))

    ctx_ref, aw_ref = reference(query, source, processed_source_t,
                                attn_weights_cat, source_mask, params)

    # bf16 encoder-side storage + single-pass MXU (default precision) => bf16-level tolerances.
    assert jnp.allclose(aw, aw_ref, rtol=5e-2, atol=2e-2), "attention-weight mismatch"
    assert jnp.allclose(ctx, ctx_ref, rtol=5e-2, atol=2e-2), "context mismatch"
    # structural invariants (hold regardless of precision)
    assert bool(jnp.all(aw >= 0.0)), "negative attention weight"
    assert jnp.allclose(jnp.sum(aw, axis=-1), 1.0, atol=5e-3), "weights do not sum to 1"
    assert float(jnp.max(jnp.where(source_mask, 0.0, aw))) < 1e-6, "masked position got weight"
    print("KERNEL_OK")
</pallas_src>

<mosaic_0001>
module attributes {stable_mosaic.version = 11 : i64} {
  func.func @_laa_kernel(%arg0: i32, %arg1: memref<2x32x1xf32, #tpu.memory_space<vmem>>, %arg2: memref<2x16x128xbf16, #tpu.memory_space<vmem>>, %arg3: memref<2x64x128xf32, #tpu.memory_space<vmem>>, %arg4: memref<2x1x128xf32, #tpu.memory_space<vmem>>, %arg5: memref<2x128x128xbf16, #tpu.memory_space<vmem>>, %arg6: memref<16x32xf32, #tpu.memory_space<vmem>>, %arg7: memref<32x64xf32, #tpu.memory_space<vmem>>, %arg8: memref<16x32xf32, #tpu.memory_space<vmem>>, %arg9: memref<1x16xf32, #tpu.memory_space<vmem>>, %arg10: memref<2x1x128xf32, #tpu.memory_space<vmem>>, %arg11: memref<2x1x128xf32, #tpu.memory_space<vmem>>) attributes {dimension_semantics = [#tpu.dimension_semantics<parallel>], iteration_bounds = array<i64: 2>, scalar_prefetch = 0 : i64, scratch_operands = 0 : i64, tpu.core_type = #tpu.core_type<tc>, window_params = [{transform_indices = @transform_0, window_bounds = array<i64: 2, 32, 1>}, {transform_indices = @transform_1, window_bounds = array<i64: 2, 16, 128>}, {transform_indices = @transform_2, window_bounds = array<i64: 2, 64, 128>}, {transform_indices = @transform_3, window_bounds = array<i64: 2, 1, 128>}, {transform_indices = @transform_4, window_bounds = array<i64: 2, 128, 128>}, {pipeline_mode = #tpu.pipeline_mode<synchronous>, transform_indices = @transform_5, window_bounds = array<i64: 16, 32>}, {pipeline_mode = #tpu.pipeline_mode<synchronous>, transform_indices = @transform_6, window_bounds = array<i64: 32, 64>}, {pipeline_mode = #tpu.pipeline_mode<synchronous>, transform_indices = @transform_7, window_bounds = array<i64: 16, 32>}, {pipeline_mode = #tpu.pipeline_mode<synchronous>, transform_indices = @transform_8, window_bounds = array<i64: 1, 16>}, {transform_indices = @transform_9, window_bounds = array<i64: 2, 1, 128>}, {transform_indices = @transform_10, window_bounds = array<i64: 2, 1, 128>}]} {
    %c0 = arith.constant 0 : index
    %c0_0 = arith.constant 0 : index
    %0 = vector.load %arg6[%c0, %c0_0] : memref<16x32xf32, #tpu.memory_space<vmem>>, vector<16x32xf32>
    %c0_1 = arith.constant 0 : index
    %c0_2 = arith.constant 0 : index
    %1 = vector.load %arg7[%c0_1, %c0_2] : memref<32x64xf32, #tpu.memory_space<vmem>>, vector<32x64xf32>
    %c0_3 = arith.constant 0 : index
    %c0_4 = arith.constant 0 : index
    %2 = vector.load %arg8[%c0_3, %c0_4] : memref<16x32xf32, #tpu.memory_space<vmem>>, vector<16x32xf32>
    %c0_5 = arith.constant 0 : index
    %c0_6 = arith.constant 0 : index
    %3 = vector.load %arg9[%c0_5, %c0_6] : memref<1x16xf32, #tpu.memory_space<vmem>>, vector<1x16xf32>
    %c0_7 = arith.constant 0 : index
    %c0_8 = arith.constant 0 : index
    %c0_9 = arith.constant 0 : index
    %4 = vector.load %arg1[%c0_7, %c0_8, %c0_9] : memref<2x32x1xf32, #tpu.memory_space<vmem>>, vector<1x32x1xf32>
    %5 = vector.shape_cast %4 : vector<1x32x1xf32> to vector<32x1xf32>
    %cst = arith.constant dense<0.000000e+00> : vector<16x1xf32>
    %6 = tpu.matmul %0, %5, %cst {dimension_numbers = #tpu.dot_dimension_numbers<[1], [0], [0], [1], [0, 0, 1, 1], [], []>} : vector<16x32xf32>, vector<32x1xf32>, vector<16x1xf32> -> vector<16x1xf32>
    %c0_10 = arith.constant 0 : index
    %c0_11 = arith.constant 0 : index
    %c0_12 = arith.constant 0 : index
    %7 = vector.load %arg3[%c0_10, %c0_11, %c0_12] : memref<2x64x128xf32, #tpu.memory_space<vmem>>, vector<1x64x128xf32>
    %8 = vector.shape_cast %7 : vector<1x64x128xf32> to vector<64x128xf32>
    %cst_13 = arith.constant dense<0.000000e+00> : vector<32x128xf32>
    %9 = tpu.matmul %1, %8, %cst_13 {dimension_numbers = #tpu.dot_dimension_numbers<[1], [0], [0], [1], [0, 0, 1, 1], [], []>} : vector<32x64xf32>, vector<64x128xf32>, vector<32x128xf32> -> vector<32x128xf32>
    %cst_14 = arith.constant dense<0.000000e+00> : vector<16x128xf32>
    %10 = tpu.matmul %2, %9, %cst_14 {dimension_numbers = #tpu.dot_dimension_numbers<[1], [0], [0], [1], [0, 0, 1, 1], [], []>} : vector<16x32xf32>, vector<32x128xf32>, vector<16x128xf32> -> vector<16x128xf32>
    %c0_15 = arith.constant 0 : index
    %c0_16 = arith.constant 0 : index
    %c0_17 = arith.constant 0 : index
    %11 = vector.load %arg2[%c0_15, %c0_16, %c0_17] : memref<2x16x128xbf16, #tpu.memory_space<vmem>>, vector<1x16x128xbf16>
    %12 = vector.shape_cast %11 : vector<1x16x128xbf16> to vector<16x128xbf16>
    %13 = arith.extf %12 : vector<16x128xbf16> to vector<16x128xf32>
    %14 = vector.broadcast %6 : vector<16x1xf32> to vector<16x128xf32>
    %15 = arith.addf %14, %13 : vector<16x128xf32>
    %16 = arith.addf %15, %10 : vector<16x128xf32>
    %17 = math.tanh %16 : vector<16x128xf32>
    %cst_18 = arith.constant dense<0.000000e+00> : vector<1x128xf32>
    %18 = tpu.matmul %3, %17, %cst_18 {dimension_numbers = #tpu.dot_dimension_numbers<[1], [0], [0], [1], [0, 0, 1, 1], [], []>} : vector<1x16xf32>, vector<16x128xf32>, vector<1x128xf32> -> vector<1x128xf32>
    %c0_19 = arith.constant 0 : index
    %c0_20 = arith.constant 0 : index
    %c0_21 = arith.constant 0 : index
    %19 = vector.load %arg4[%c0_19, %c0_20, %c0_21] : memref<2x1x128xf32, #tpu.memory_space<vmem>>, vector<1x1x128xf32>
    %20 = vector.shape_cast %19 : vector<1x1x128xf32> to vector<1x128xf32>
    %21 = arith.addf %18, %20 : vector<1x128xf32>
    %cst_22 = arith.constant dense<0xFF800000> : vector<1xf32>
    %22 = vector.multi_reduction <maximumf>, %21, %cst_22 [1] : vector<1x128xf32> to vector<1xf32>
    %23 = vector.shape_cast %22 : vector<1xf32> to vector<1x1xf32>
    %24 = vector.broadcast %23 : vector<1x1xf32> to vector<1x128xf32>
    %25 = arith.subf %21, %24 : vector<1x128xf32>
    %26 = math.exp %25 : vector<1x128xf32>
    %cst_23 = arith.constant dense<0.000000e+00> : vector<1xf32>
    %27 = vector.multi_reduction <add>, %26, %cst_23 [1] : vector<1x128xf32> to vector<1xf32>
    %28 = vector.shape_cast %27 : vector<1xf32> to vector<1x1xf32>
    %29 = tpu.reciprocal %28 {approx = true} : vector<1x1xf32> -> vector<1x1xf32>
    %30 = vector.broadcast %29 : vector<1x1xf32> to vector<1x128xf32>
    %31 = arith.mulf %26, %30 : vector<1x128xf32>
    %c0_24 = arith.constant 0 : index
    %c0_25 = arith.constant 0 : index
    %c0_26 = arith.constant 0 : index
    %32 = vector.load %arg11[%c0_24, %c0_25, %c0_26] : memref<2x1x128xf32, #tpu.memory_space<vmem>>, vector<1x1x128xf32>
    %33 = vector.shape_cast %32 : vector<1x1x128xf32> to vector<1x128xf32>
    %34 = vector.shape_cast %31 : vector<1x128xf32> to vector<1x1x128xf32>
    tpu.vector_store %arg11[%c0_24, %c0_25, %c0_26], %34 {strides = array<i32>} : memref<2x1x128xf32, #tpu.memory_space<vmem>>, vector<1x1x128xf32>,
    %35 = arith.truncf %31 : vector<1x128xf32> to vector<1x128xbf16>
    %c0_27 = arith.constant 0 : index
    %c0_28 = arith.constant 0 : index
    %c0_29 = arith.constant 0 : index
    %36 = vector.load %arg5[%c0_27, %c0_28, %c0_29] : memref<2x128x128xbf16, #tpu.memory_space<vmem>>, vector<1x128x128xbf16>
    %37 = vector.shape_cast %36 : vector<1x128x128xbf16> to vector<128x128xbf16>
    %cst_30 = arith.constant dense<0.000000e+00> : vector<1x128xf32>
    %38 = tpu.matmul %35, %37, %cst_30 {dimension_numbers = #tpu.dot_dimension_numbers<[1], [0], [0], [1], [0, 0, 1, 1], [], []>} : vector<1x128xbf16>, vector<128x128xbf16>, vector<1x128xf32> -> vector<1x128xf32>
    %c0_31 = arith.constant 0 : index
    %c0_32 = arith.constant 0 : index
    %c0_33 = arith.constant 0 : index
    %39 = vector.load %arg10[%c0_31, %c0_32, %c0_33] : memref<2x1x128xf32, #tpu.memory_space<vmem>>, vector<1x1x128xf32>
    %40 = vector.shape_cast %39 : vector<1x1x128xf32> to vector<1x128xf32>
    %41 = vector.shape_cast %38 : vector<1x128xf32> to vector<1x1x128xf32>
    tpu.vector_store %arg10[%c0_31, %c0_32, %c0_33], %41 {strides = array<i32>} : memref<2x1x128xf32, #tpu.memory_space<vmem>>, vector<1x1x128xf32>,
    %c1 = arith.constant 1 : index
    %c0_34 = arith.constant 0 : index
    %c0_35 = arith.constant 0 : index
    %42 = vector.load %arg1[%c1, %c0_34, %c0_35] : memref<2x32x1xf32, #tpu.memory_space<vmem>>, vector<1x32x1xf32>
    %43 = vector.shape_cast %42 : vector<1x32x1xf32> to vector<32x1xf32>
    %cst_36 = arith.constant dense<0.000000e+00> : vector<16x1xf32>
    %44 = tpu.matmul %0, %43, %cst_36 {dimension_numbers = #tpu.dot_dimension_numbers<[1], [0], [0], [1], [0, 0, 1, 1], [], []>} : vector<16x32xf32>, vector<32x1xf32>, vector<16x1xf32> -> vector<16x1xf32>
    %c1_37 = arith.constant 1 : index
    %c0_38 = arith.constant 0 : index
    %c0_39 = arith.constant 0 : index
    %45 = vector.load %arg3[%c1_37, %c0_38, %c0_39] : memref<2x64x128xf32, #tpu.memory_space<vmem>>, vector<1x64x128xf32>
    %46 = vector.shape_cast %45 : vector<1x64x128xf32> to vector<64x128xf32>
    %cst_40 = arith.constant dense<0.000000e+00> : vector<32x128xf32>
    %47 = tpu.matmul %1, %46, %cst_40 {dimension_numbers = #tpu.dot_dimension_numbers<[1], [0], [0], [1], [0, 0, 1, 1], [], []>} : vector<32x64xf32>, vector<64x128xf32>, vector<32x128xf32> -> vector<32x128xf32>
    %cst_41 = arith.constant dense<0.000000e+00> : vector<16x128xf32>
    %48 = tpu.matmul %2, %47, %cst_41 {dimension_numbers = #tpu.dot_dimension_numbers<[1], [0], [0], [1], [0, 0, 1, 1], [], []>} : vector<16x32xf32>, vector<32x128xf32>, vector<16x128xf32> -> vector<16x128xf32>
    %c1_42 = arith.constant 1 : index
    %c0_43 = arith.constant 0 : index
    %c0_44 = arith.constant 0 : index
    %49 = vector.load %arg2[%c1_42, %c0_43, %c0_44] : memref<2x16x128xbf16, #tpu.memory_space<vmem>>, vector<1x16x128xbf16>
    %50 = vector.shape_cast %49 : vector<1x16x128xbf16> to vector<16x128xbf16>
    %51 = arith.extf %50 : vector<16x128xbf16> to vector<16x128xf32>
    %52 = vector.broadcast %44 : vector<16x1xf32> to vector<16x128xf32>
    %53 = arith.addf %52, %51 : vector<16x128xf32>
    %54 = arith.addf %53, %48 : vector<16x128xf32>
    %55 = math.tanh %54 : vector<16x128xf32>
    %cst_45 = arith.constant dense<0.000000e+00> : vector<1x128xf32>
    %56 = tpu.matmul %3, %55, %cst_45 {dimension_numbers = #tpu.dot_dimension_numbers<[1], [0], [0], [1], [0, 0, 1, 1], [], []>} : vector<1x16xf32>, vector<16x128xf32>, vector<1x128xf32> -> vector<1x128xf32>
    %c1_46 = arith.constant 1 : index
    %c0_47 = arith.constant 0 : index
    %c0_48 = arith.constant 0 : index
    %57 = vector.load %arg4[%c1_46, %c0_47, %c0_48] : memref<2x1x128xf32, #tpu.memory_space<vmem>>, vector<1x1x128xf32>
    %58 = vector.shape_cast %57 : vector<1x1x128xf32> to vector<1x128xf32>
    %59 = arith.addf %56, %58 : vector<1x128xf32>
    %cst_49 = arith.constant dense<0xFF800000> : vector<1xf32>
    %60 = vector.multi_reduction <maximumf>, %59, %cst_49 [1] : vector<1x128xf32> to vector<1xf32>
    %61 = vector.shape_cast %60 : vector<1xf32> to vector<1x1xf32>
    %62 = vector.broadcast %61 : vector<1x1xf32> to vector<1x128xf32>
    %63 = arith.subf %59, %62 : vector<1x128xf32>
    %64 = math.exp %63 : vector<1x128xf32>
    %cst_50 = arith.constant dense<0.000000e+00> : vector<1xf32>
    %65 = vector.multi_reduction <add>, %64, %cst_50 [1] : vector<1x128xf32> to vector<1xf32>
    %66 = vector.shape_cast %65 : vector<1xf32> to vector<1x1xf32>
    %67 = tpu.reciprocal %66 {approx = true} : vector<1x1xf32> -> vector<1x1xf32>
    %68 = vector.broadcast %67 : vector<1x1xf32> to vector<1x128xf32>
    %69 = arith.mulf %64, %68 : vector<1x128xf32>
    %c1_51 = arith.constant 1 : index
    %c0_52 = arith.constant 0 : index
    %c0_53 = arith.constant 0 : index
    %70 = vector.load %arg11[%c1_51, %c0_52, %c0_53] : memref<2x1x128xf32, #tpu.memory_space<vmem>>, vector<1x1x128xf32>
    %71 = vector.shape_cast %70 : vector<1x1x128xf32> to vector<1x128xf32>
    %72 = vector.shape_cast %69 : vector<1x128xf32> to vector<1x1x128xf32>
    tpu.vector_store %arg11[%c1_51, %c0_52, %c0_53], %72 {strides = array<i32>} : memref<2x1x128xf32, #tpu.memory_space<vmem>>, vector<1x1x128xf32>,
    %73 = arith.truncf %69 : vector<1x128xf32> to vector<1x128xbf16>
    %c1_54 = arith.constant 1 : index
    %c0_55 = arith.constant 0 : index
    %c0_56 = arith.constant 0 : index
    %74 = vector.load %arg5[%c1_54, %c0_55, %c0_56] : memref<2x128x128xbf16, #tpu.memory_space<vmem>>, vector<1x128x128xbf16>
    %75 = vector.shape_cast %74 : vector<1x128x128xbf16> to vector<128x128xbf16>
    %cst_57 = arith.constant dense<0.000000e+00> : vector<1x128xf32>
    %76 = tpu.matmul %73, %75, %cst_57 {dimension_numbers = #tpu.dot_dimension_numbers<[1], [0], [0], [1], [0, 0, 1, 1], [], []>} : vector<1x128xbf16>, vector<128x128xbf16>, vector<1x128xf32> -> vector<1x128xf32>
    %c1_58 = arith.constant 1 : index
    %c0_59 = arith.constant 0 : index
    %c0_60 = arith.constant 0 : index
    %77 = vector.load %arg10[%c1_58, %c0_59, %c0_60] : memref<2x1x128xf32, #tpu.memory_space<vmem>>, vector<1x1x128xf32>
    %78 = vector.shape_cast %77 : vector<1x1x128xf32> to vector<1x128xf32>
    %79 = vector.shape_cast %76 : vector<1x128xf32> to vector<1x1x128xf32>
    tpu.vector_store %arg10[%c1_58, %c0_59, %c0_60], %79 {strides = array<i32>} : memref<2x1x128xf32, #tpu.memory_space<vmem>>, vector<1x1x128xf32>,
    return
  }
  func.func @transform_0(%arg0: i32) -> (i32, i32, i32) {
    %c0_i32 = arith.constant 0 : i32
    %c0_i32_0 = arith.constant 0 : i32
    %c0_i32_1 = arith.constant 0 : i32
    return %arg0, %c0_i32, %c0_i32_0 : i32, i32, i32
  }
  func.func @transform_1(%arg0: i32) -> (i32, i32, i32) {
    %c0_i32 = arith.constant 0 : i32
    %c0_i32_0 = arith.constant 0 : i32
    %c0_i32_1 = arith.constant 0 : i32
    return %arg0, %c0_i32, %c0_i32_0 : i32, i32, i32
  }
  func.func @transform_2(%arg0: i32) -> (i32, i32, i32) {
    %c0_i32 = arith.constant 0 : i32
    %c0_i32_0 = arith.constant 0 : i32
    %c0_i32_1 = arith.constant 0 : i32
    return %arg0, %c0_i32, %c0_i32_0 : i32, i32, i32
  }
  func.func @transform_3(%arg0: i32) -> (i32, i32, i32) {
    %c0_i32 = arith.constant 0 : i32
    %c0_i32_0 = arith.constant 0 : i32
    %c0_i32_1 = arith.constant 0 : i32
    return %arg0, %c0_i32, %c0_i32_0 : i32, i32, i32
  }
  func.func @transform_4(%arg0: i32) -> (i32, i32, i32) {
    %c0_i32 = arith.constant 0 : i32
    %c0_i32_0 = arith.constant 0 : i32
    %c0_i32_1 = arith.constant 0 : i32
    return %arg0, %c0_i32, %c0_i32_0 : i32, i32, i32
  }
  func.func @transform_5(%arg0: i32) -> (i32, i32) {
    %c0_i32 = arith.constant 0 : i32
    %c0_i32_0 = arith.constant 0 : i32
    %c0_i32_1 = arith.constant 0 : i32
    return %c0_i32, %c0_i32_0 : i32, i32
  }
  func.func @transform_6(%arg0: i32) -> (i32, i32) {
    %c0_i32 = arith.constant 0 : i32
    %c0_i32_0 = arith.constant 0 : i32
    %c0_i32_1 = arith.constant 0 : i32
    return %c0_i32, %c0_i32_0 : i32, i32
  }
  func.func @transform_7(%arg0: i32) -> (i32, i32) {
    %c0_i32 = arith.constant 0 : i32
    %c0_i32_0 = arith.constant 0 : i32
    %c0_i32_1 = arith.constant 0 : i32
    return %c0_i32, %c0_i32_0 : i32, i32
  }
  func.func @transform_8(%arg0: i32) -> (i32, i32) {
    %c0_i32 = arith.constant 0 : i32
    %c0_i32_0 = arith.constant 0 : i32
    %c0_i32_1 = arith.constant 0 : i32
    return %c0_i32, %c0_i32_0 : i32, i32
  }
  func.func @transform_9(%arg0: i32) -> (i32, i32, i32) {
    %c0_i32 = arith.constant 0 : i32
    %c0_i32_0 = arith.constant 0 : i32
    %c0_i32_1 = arith.constant 0 : i32
    return %arg0, %c0_i32, %c0_i32_0 : i32, i32, i32
  }
  func.func @transform_10(%arg0: i32) -> (i32, i32, i32) {
    %c0_i32 = arith.constant 0 : i32
    %c0_i32_0 = arith.constant 0 : i32
    %c0_i32_1 = arith.constant 0 : i32
    return %arg0, %c0_i32, %c0_i32_0 : i32, i32, i32
  }
}

</mosaic_0001>

<bundles_post_ra>
// kernel: tpu_custom_call.1
= control target key start
LH: loop header
LB: loop body
LE: loop exit
PB: predicated region body
PF: predicated region fallthrough
CT: control target
= control target key end

     0   :  { %s2757_s0 = inlined_call_operand.vmem [shape: f32[4,32,1], index: 0, kind: input, shape index: {}]   ;;  %s2758_s1 = inlined_call_operand.vmem [shape: bf16[4,16,128], index: 1, kind: input, shape index: {}]   ;;  %s2759_s2 = inlined_call_operand.hbm [shape: f32[4,64,128], index: 2, kind: input, shape index: {}]   ;;  %s2760_s3 = inlined_call_operand.vmem [shape: f32[4,1,128], index: 3, kind: input, shape index: {}]   ;;  %s2761_s4 = inlined_call_operand.hbm [shape: bf16[4,128,128], index: 4, kind: input, shape index: {}]   ;;  %s2762_s5 = inlined_call_operand.vmem [shape: f32[16,32], index: 5, kind: input, shape index: {}]   ;;  %s2763_s6 = inlined_call_operand.vmem [shape: f32[32,64], index: 6, kind: input, shape index: {}]   ;;  %s2764_s7 = inlined_call_operand.vmem [shape: f32[16,32], index: 7, kind: input, shape index: {}]   ;;  %s2765_s8 = inlined_call_operand.vmem [shape: f32[1,16], index: 8, kind: input, shape index: {}]   ;;  %s2766_s9 = inlined_call_operand.hbm [shape: f32[4,1,128], index: 9, kind: output, shape index: {0}]   ;;  %s2767_s10 = inlined_call_operand.hbm [shape: f32[4,1,128], index: 10, kind: output, shape index: {1}]  }
   0x1   :  { %2776 = sst [smem:[#allocation18_spill]] %s2759_s2 }
   0x2   :  { %16 = vsyncpa [#allocation3], 0 }
   0x3   :  { %18 = vsyncpa [#allocation3 + $0x1], 0 }
   0x4   :  { %19 = vsyncpa [#allocation6], 0 }
   0x5   :  { %21 = vsyncpa [#allocation6 + $0x1], 0 }
   0x6   :  { %22 = vsyncpa [#allocation4], 0 }
   0x7   :  { %24 = vsyncpa [#allocation4 + $0x1], 0 }
   0x8   :  { %25 = vsyncpa [#allocation9], 0 }
   0x9   :  { %27 = vsyncpa [#allocation9 + $0x1], 0  ;;  %s2312_s13 = smov 0   ;;  %s2314_s14 = smov 0  }
   0xa   :  { %s2316_s15 = smov 0   ;;  %s2318_s16 = smov 0  }
   0xb LB: > { %2777 = sst [smem:[#allocation14_spill]] %s2238_s15  ;;  %s2333_s17 = sadd.s32 4294967295, %s2242_s16   ;;  %s2242_s16 = sphi %s2318_s16, %s2796_s16   ;;  %s2238_s15 = sphi %s2316_s15, %s2798_s15   ;;  %s2234_s14 = sphi %s2314_s14, %s2800_s14   ;;  %s2230_s13 = sphi %s2312_s13, %s2799_s13  }
   0xc   : > { %s1660_s18 = sadd.s32 4294967294, %s2242_s16   ;;  %s2337_s19 = sadd.s32 1, %s2242_s16  }
   0xd   : > { %2778 = sst [smem:[#allocation15_spill]] %s2337_s19  ;;  %s92_s20 = sadd.s32 1, %s2238_s15 }
   0xe   : > { %s89_s21 = ssub.s32 %s2242_s16, %s2337_s19  ;;  %p99_p0 = scmp.ne.s32.totalorder %s2238_s15, %s2234_s14 }
   0xf   : > { %p90_p1 = scmp.eq.s32.totalorder %s89_s21, 0  ;;  %p100_p2 = scmp.eq.s32.totalorder %s2242_s16, 0 }
  0x10   : > { %p105_p3 = scmp.ne.s32.totalorder %s2234_s14, %s2230_s13  ;;  %p106_p4 = scmp.eq.s32.totalorder %s2333_s17, 0 }
  0x11   : > { %s2349_s22 = scalar_select %p90_p1, %s2238_s15, %s92_s20  }
  0x12   : > { %p2351_p5 = por %p100_p2, %p99_p0  ;;  %p2355_p6 = por %p106_p4, %p105_p3 }
  0x13   : > { %2779 = sst [smem:[#allocation16_spill]] %s2349_s22  ;;  %p265_p7 = scmp.eq.s32.totalorder %s2333_s17, 1 }
  0x14   : > { %s2781_s24 = scalar_select %p2355_p6, 1, 0 }
  0x15   : > { %p271_p8 = scmp.eq.s32.totalorder %s1660_s18, 1  ;;  %p2011_p10 = scmp.lt.s32.totalorder %s2242_s16, 2 }
  0x16   : > { %p2362_p11 = por %p265_p7, %p99_p0  ;;  %s2371_s27 = sand.u32 1, %s2238_s15  }
  0x17   : > { %p2366_p12 = por %p271_p8, %p105_p3  ;;  %s2770_s28 = sshll.u32 %s2242_s16, 11 }
  0x18   : > { %s2782_s25 = scalar_select %p2362_p11, 1, 0 }
  0x19   : > { %s2783_s26 = scalar_select %p2366_p12, 1, 0 }
  0x1a   : > { %s2769_s29 = sshll.u32 %s2371_s27, 7  ;;  %s2785_s2 = sld [smem:[#allocation18_spill]] }
  0x1b   : > { %2784 = sst [smem:[#allocation17_spill]] %s2783_s26  ;;  %s353_s18 = scalar_lea.vmem [#allocation2], %s2769_s29 }
  0x1c   : > { %s361_s20 = sshll.u32 %s353_s18, 4  ;;  %p2386_p13 = pnand %p2011_p10, %p2351_p5  ;;  %s2390_s20 = int_to_ptr.vmem [resolvable:$true] %s361_s20 }
  0x1e   : > { %p2090_p1 = pneg %p2386_p13 }
  0x20   : > { %s2380_s12 = scalar_lea.hbm %s2785_s2, %s2770_s28  ;;  %s2093_s23 = scalar_lea.hbm %s2785_s2, 4096 }
  0x21   : > { %s2088_s15 = scalar_lea.hbm %s2380_s12, 2048  ;;  %p2094_p4 = scmp.lt.s32.totalorder %s2380_s12, %s2785_s2 }
  0x22   : > { %p2089_p0 = scmp.ne.s32.totalorder %s2380_s12, %s2088_s15  ;;  %p2095_p5 = scmp.lt.s32.totalorder %s2093_s23, %s2088_s15 }
  0x24   : > { %p2091_p2 = pnand %p2090_p1, %p2089_p0  ;;  %p2096_p7 = por %p2095_p5, %p2094_p4 }
  0x26   : > { %p2092_p3 = pneg %p2091_p2 }
  0x28   : > { %p2097_p8 = pnand %p2096_p7, %p2092_p3 }
  0x2a   : > { %2100 = shalt.err (!%p2097_p8)
}
  0x2b   : > { %s2101_s28 = scalar_lea.vmem %s2390_s20, 2048  ;;  %s2244_s30 = smov [#allocation2]  }
  0x2c   : > { %p2102_p10 = scmp.ne.s32.totalorder %s2390_s20, %s2101_s28  ;;  %s2106_s11 = sshll.u32 %s2244_s30, 4  ;;  %s2107_s11 = int_to_ptr.vmem [resolvable:$false] %s2106_s11 }
  0x2d   : > { %s2108_s22 = scalar_lea.vmem %s2107_s11, 4096  ;;  %p2109_p9 = scmp.lt.s32.totalorder %s2390_s20, %s2107_s11 }
  0x2e   : > { %p2104_p0 = pnand %p2102_p10, %p2090_p1  ;;  %p2110_p12 = scmp.lt.s32.totalorder %s2108_s22, %s2101_s28 }
  0x30   : > { %p2105_p2 = pneg %p2104_p0  ;;  %p2111_p11 = por %p2110_p12, %p2109_p9 }
  0x32   : > { %p2112_p4 = pnand %p2111_p11, %p2105_p2 }
  0x34   : > { %2115 = shalt.err (!%p2112_p4)
}
  0x35   : > { %s2245_s15 = smov 128   ;;  %s2246_s29 = smov 8  }
  0x36   : > { %s2787_s23 = scalar_lea.sflag [#allocation3], %s2371_s27  ;;  %p1671_p3 = scmp.ge.s32.totalorder %s2242_s16, 1 }
  0x37   : > { %2000 = dma.hbm_to_vmem [thread:$0]  (!%p2386_p13), %s2380_s12, 2048, %s2390_s20, %s2787_s23, %s2245_s15, %s2245_s15, %s2246_s29  }
  0x38   : > { %p399_p5 = scmp.lt.s32.totalorder %s2242_s16, 3  ;;  %s2789_s28 = sshll.u32 %s2242_s16, 11 }
  0x39   : > { %s2430_s11 = scalar_lea.hbm %s2761_s4, %s2789_s28  ;;  %s2790_s2 = sshll.u32 %s2371_s27, 7 }
  0x3a   : > { %p2421_p9 = pnand %p1671_p3, %p399_p5  ;;  %s383_s19 = scalar_lea.vmem [#allocation5], %s2790_s2 }
  0x3b   : > { %s391_s26 = sshll.u32 %s383_s19, 4  ;;  %s380_s12 = scalar_lea.sflag [#allocation6], %s2371_s27  ;;  %s2434_s26 = int_to_ptr.vmem [resolvable:$true] %s391_s26 }
  0x3c   : > { %s2116_s20 = scalar_lea.hbm %s2430_s11, 2048  ;;  %s2121_s23 = scalar_lea.hbm %s2761_s4, 4096 }
  0x3d   : > { %p2117_p11 = scmp.ne.s32.totalorder %s2430_s11, %s2116_s20  ;;  %p2122_p8 = scmp.lt.s32.totalorder %s2430_s11, %s2761_s4 }
  0x3e   : > { %p2123_p10 = scmp.lt.s32.totalorder %s2121_s23, %s2116_s20 }
  0x3f   : > { %p2119_p12 = pnand %p2117_p11, %p2090_p1 }
  0x40   : > { %p2124_p0 = por %p2123_p10, %p2122_p8 }
  0x41   : > { %p2120_p7 = pneg %p2119_p12 }
  0x43   : > { %p2125_p2 = pnand %p2124_p0, %p2120_p7 }
  0x45   : > { %2128 = shalt.err (!%p2125_p2)
}
  0x46   : > { %s2129_s2 = scalar_lea.vmem %s2434_s26, 2048  ;;  %s2247_s19 = smov [#allocation5]  }
  0x47   : > { %p2130_p4 = scmp.ne.s32.totalorder %s2434_s26, %s2129_s2  ;;  %s2134_s30 = sshll.u32 %s2247_s19, 4  ;;  %s2135_s30 = int_to_ptr.vmem [resolvable:$false] %s2134_s30 }
  0x48   : > { %s2136_s15 = scalar_lea.vmem %s2135_s30, 4096  ;;  %p2137_p11 = scmp.lt.s32.totalorder %s2434_s26, %s2135_s30 }
  0x49   : > { %p2132_p3 = pnand %p2130_p4, %p2090_p1  ;;  %p2138_p12 = scmp.lt.s32.totalorder %s2136_s15, %s2129_s2 }
  0x4b   : > { %p2133_p5 = pneg %p2132_p3  ;;  %p2139_p6 = por %p2138_p12, %p2137_p11 }
  0x4d   : > { %p2140_p8 = pnand %p2139_p6, %p2133_p5 }
  0x4f   : > { %2143 = shalt.err (!%p2140_p8)
}
  0x50   : > { %s2248_s20 = smov 64   ;;  %s2249_s29 = smov 4  }
  0x51   : > { %2003 = dma.hbm_to_vmem [thread:$0]  (!%p2386_p13), %s2430_s11, 2048, %s2434_s26, %s380_s12, %s2248_s20, %s2248_s20, %s2249_s29  }
  0x52   : > { %403 = sbr.rel (%p2421_p9) target bundleno = 1697 (0x6a1), region = 56  ;;  %s2464_s23 = sand.u32 (!%p2421_p9), 1, %s2234_s14  }
  0x53   : > { %s1672_s28 = sshll.u32 (!%p2421_p9), %s2464_s23, 7  ;;  %s406_s18 = scalar_lea.sflag (!%p2421_p9), [#allocation3], %s2464_s23 }
  0x54   : > { %s2468_s2 = scalar_lea.vmem (!%p2421_p9), [#allocation2], %s1672_s28  ;;  %p2791_p6 = scmp.ne.s32.totalorder (!%p2421_p9), %s2781_s24, 0 }
  0x57   : > { %2213 = dma.done.wait (%p2791_p6), %s406_s18, 2048  }
  0x58   : > { %2215 = vsyncadd (%p2791_p6), %s406_s18, 4294965248  ;;  %s415_s26 = scalar_lea.sflag [#allocation6], %s2464_s23  ;;  %s2475_s27 = scalar_lea.vmem [#allocation5], %s1672_s28 }
  0x59   : > { %2217 = dma.done.wait (%p2791_p6), %s415_s26, 2048  }
  0x5a   : > { %2219 = vsyncadd (%p2791_p6), %s415_s26, 4294965248  ;;  %s1676_s21 = sshll.u32 %s2333_s17, 1  ;;  %v2250_v0 = vmov 0   ;;  %vm518_vm0 = vcmask 261120   ;;  %v2495_v3 = vld [vmem:[%s2762_s5] sm:$0xff]  ;;  %v2504_v6 = vld [vmem:[%s2762_s5 + $0x8] sm:$0xff] }
  0x5b   : > { %p482_p13 = scmp.lt.s32.totalorder %s1676_s21, 3  ;;  %2054 = vset.pattern.permute.xlu0 %v2250_v0  ;;  %2055 = vset.pattern.permute.xlu1 %v2250_v0  ;;  %v607_v7 = vld [vmem:[%s2468_s2 + $0x38] sm:$0xff]  ;;  %v2510_v8 = vld [vmem:[%s2763_s6] sm:$0xff]  ;;  %vm608_vm1 = vcmask 523264   ;;  %v606_v9 = vld [vmem:[%s2468_s2 + $0x30] sm:$0xff]  ;;  %v2251_v27 = vmov 0.0  }
  0x5c   : > { %1855 = vmatprep.mubr.msk.f32.mxu0 %vm518_vm0, %v2495_v3  ;;  %v605_v10 = vld [vmem:[%s2468_s2 + $0x28] sm:$0xff]  ;;  %v604_v11 = vld [vmem:[%s2468_s2 + $0x20] sm:$0xff]  ;;  %v603_v12 = vld [vmem:[%s2468_s2 + $0x18] sm:$0xff]  ;;  %1898 = vmatprep.subr.bf16.mxu1 %v2251_v27  ;;  %vm2252_vm2 = vmmov 0   ;;  %vm808_vm3 = vcmask 130048   ;;  %vm882_vm4 = vcmask 1040384  }
  0x5d   : > { %s2802_s21 = smov (!%p482_p13, %s1676_s21), 3  ;;  %v602_v13 = vld [vmem:[%s2468_s2 + $0x10] sm:$0xff]  ;;  %v601_v14 = vld [vmem:[%s2468_s2 + $0x8] sm:$0xff]  ;;  %v600_v15 = vld [vmem:[%s2468_s2] sm:$0xff]  ;;  %1914 = vmatprep.mubr.msk.bf16.mxu1 %vm2252_vm2, %v2251_v27  ;;  %s1764_s29 = sshll.u32 %s2333_s17, 5 }
  0x5e   : > { %s1762_s22 = sshll.u32 %s2802_s21, 5  ;;  %v2526_v16 = vld [vmem:[%s2763_s6 + $0x8] sm:$0xff]  ;;  %v2531_v17 = vld [vmem:[%s2763_s6 + $0x10] sm:$0xff]  ;;  %v2540_v18 = vld [vmem:[%s2763_s6 + $0x18] sm:$0xff]  ;;  %s1763_s28 = sshll.u32 %s2802_s21, 3 }
  0x5f   : > { %s2488_s19 = scalar_lea.vmem %s2757_s0, %s1762_s22  ;;  %v2547_v19 = vld [vmem:[%s2764_s7] sm:$0xff]  ;;  %v2554_v26 = vld [vmem:[%s2764_s7 + $0x8] sm:$0xff]  ;;  %s2568_s22 = scalar_lea.vmem %s2758_s1, %s1763_s28  ;;  %v1713_v46 = vld [vmem:[%s2468_s2 + $0x78] sm:$0xff] }
  0x60   : > { %v517_v1 = vld [vmem:[%s2488_s19 + $0x18] sm:$0xff]  ;;  %v516_v2 = vld [vmem:[%s2488_s19 + $0x10] sm:$0xff]  ;;  %v515_v4 = vld [vmem:[%s2488_s19 + $0x8] sm:$0xff]  ;;  %s1470_s26 = scalar_lea.sflag [#allocation9], %s2464_s23  ;;  %p2792_p9 = scmp.ne.s32.totalorder %s2782_s25, 0 }
  0x61   : > { %1847 = vmatprep.subr.mxu0 %v517_v1  ;;  %v514_v5 = vld [vmem:[%s2488_s19] sm:$0xff]  ;;  %v1703_v41 = vld [vmem:[%s2488_s19 + $0x38] sm:$0xff]  ;;  %v1702_v43 = vld [vmem:[%s2488_s19 + $0x30] sm:$0xff]  ;;  %s2253_s11 = smov [#allocation8]  }
  0x62   : > { %1848 = vmatpush3.msra.mxu0 %v517_v1  ;;  %v1767_v28 = vld [vmem:[%s2568_s22] sm:$0xff]   ;;  %v1701_v44 = vld [vmem:[%s2488_s19 + $0x28] sm:$0xff]  ;;  %v1712_v47 = vld [vmem:[%s2468_s2 + $0x70] sm:$0xff]  ;;  %s2148_s12 = sshll.u32 %s2253_s11, 4  ;;  %s2149_s12 = int_to_ptr.vmem [resolvable:$false] %s2148_s12 }
  0x63   : > { %1849 = vmatprep.subr.mxu0 %v516_v2  ;;  %v1769_v30 = vunpack.c.h.bf16 %v1767_v28  ;;  %v1768_v31 = vunpack.c.l.bf16 %v1767_v28  ;;  %v2574_v40 = vld [vmem:[%s2765_s8] sm:$0x1]  ;;  %v1711_v48 = vld [vmem:[%s2468_s2 + $0x68] sm:$0xff]  ;;  %v1709_v50 = vld [vmem:[%s2468_s2 + $0x58] sm:$0xff] }
  0x64   : > { %1850 = vmatpush3.msra.mxu0 %v516_v2  ;;  %v1700_v45 = vld [vmem:[%s2488_s19 + $0x20] sm:$0xff]  ;;  %v1708_v51 = vld [vmem:[%s2468_s2 + $0x50] sm:$0xff]  ;;  %v1707_v52 = vld [vmem:[%s2468_s2 + $0x48] sm:$0xff]  ;;  %s2150_s19 = scalar_lea.vmem %s2149_s12, 64 }
  0x65   : > { %1851 = vmatprep.subr.mxu0 %v515_v4  ;;  %v1710_v49 = vld [vmem:[%s2468_s2 + $0x60] sm:$0xff]  ;;  %v2056_v1 = vld [vmem:[%s2475_s27 + $0x38] sm:$0xff]   ;;  %v2057_v2 = vld [vmem:[%s2475_s27 + $0x30] sm:$0xff]  }
  0x66   : > { %1852 = vmatpush3.msra.mxu0 %v515_v4  ;;  %v1706_v53 = vld [vmem:[%s2468_s2 + $0x40] sm:$0xff]  ;;  %s2609_s2 = scalar_lea.vmem %s2760_s3, %s2802_s21  ;;  %1899 = vmatpush3.bf16.msra.mxu1 %v2056_v1  ;;  %s1674_s21 = sshll.u32 %s2464_s23, 1 }
  0x67   : > { %1853 = vmatprep.subr.mxu0 %v514_v5  ;;  %v807_v54 = vld [vmem:[%s2609_s2] sm:$0x1]  ;;  %1900 = vmatprep.subr.bf16.mxu1 %v2251_v27  ;;  %s2640_s30 = scalar_lea.vmem [#allocation8], %s1674_s21  ;;  %s2655_s15 = scalar_lea.vmem [#allocation7], %s1674_s21 }
  0x68   : > { %1854 = vmatpush3.msra.mxu0 %v514_v5  ;;  %v2059_v4 = vld [vmem:[%s2475_s27 + $0x20] sm:$0xff]   ;;  %s1499_s20 = sshll.u32 %s2640_s30, 4  ;;  %s2669_s20 = int_to_ptr.vmem [resolvable:$true] %s1499_s20 }
  0x69   : > { %1856 = vmatmul.mubr.msk.f32.vlgmr.msra.gmra.mxu0 %vm518_vm0, %v2504_v6  ;;  %1858 = vmatprep.subr.mxu0 %v607_v7  ;;  %p2151_p0 = scmp.lt.s32.totalorder %s2669_s20, %s2149_s12 }
  0x6a   : > { %1859 = vmatpush3.msra.mxu0 %v607_v7  ;;  %1874 = vmatprep.mubr.msk.f32.mxu0 %vm608_vm1, %v2510_v8 }
  0x6b   : > { %1860 = vmatprep.subr.mxu0 %v606_v9  ;;  %1901 = vmatpush3.bf16.msra.mxu1 %v2057_v2 }
  0x6c   : > { %1861 = vmatpush3.msra.mxu0 %v606_v9  ;;  %1902 = vmatprep.subr.bf16.mxu1 %v2251_v27 }
  0x6d   : > { %1862 = vmatprep.subr.mxu0 %v605_v10 }
  0x6e   : > { %1863 = vmatpush3.msra.mxu0 %v605_v10  ;;  %v2060_v10 = vld [vmem:[%s2475_s27 + $0x18] sm:$0xff]  }
  0x6f   : > { %1864 = vmatprep.subr.mxu0 %v604_v11 }
  0x70   : > { %1865 = vmatpush3.msra.mxu0 %v604_v11  ;;  %v2061_v11 = vld [vmem:[%s2475_s27 + $0x10] sm:$0xff]  }
  0x71   : > { %1866 = vmatprep.subr.mxu0 %v603_v12 }
  0x72   : > { %1867 = vmatpush3.msra.mxu0 %v603_v12  ;;  %v2062_v12 = vld [vmem:[%s2475_s27 + $0x8] sm:$0xff]  }
  0x73   : > { %1868 = vmatprep.subr.mxu0 %v602_v13 }
  0x74   : > { %1869 = vmatpush3.msra.mxu0 %v602_v13  ;;  %v2063_v13 = vld [vmem:[%s2475_s27] sm:$0xff]  }
  0x75   : > { %1870 = vmatprep.subr.mxu0 %v601_v14 }
  0x76   : > { %1871 = vmatpush3.msra.mxu0 %v601_v14  ;;  %v1774_v14 = vld [vmem:[%s2568_s22 + $0x8] sm:$0xff]   ;;  %s2144_s22 = scalar_lea.vmem %s2669_s20, 32 }
  0x77   : > { %1872 = vmatprep.subr.mxu0 %v600_v15  ;;  %p2145_p1 = scmp.ne.s32.totalorder %s2669_s20, %s2144_s22  ;;  %p2152_p2 = scmp.lt.s32.totalorder %s2150_s19, %s2144_s22 }
  0x78   : > { %1873 = vmatpush3.msra.mxu0 %v600_v15 }
  0x79   : > { %1875 = vmatmul.mubr.msk.f32.vlgmr.msra.gmra.mxu0 %vm608_vm1, %v2526_v16  ;;  %p2146_p7 = pnand %p2145_p1, %p2792_p9  ;;  %p2153_p4 = por %p2152_p2, %p2151_p0 }
  0x7a   : > { %1877 = vmatprep.mubr.msk.f32.mxu0 %vm608_vm1, %v2531_v17 }
  0x7b   : > { %p2147_p10 = pneg %p2146_p7 }
  0x7d   : > { %1878 = vmatmul.mubr.msk.f32.gmra.mxu0 %vm608_vm1, %v2540_v18  ;;  %p2154_p3 = pnand %p2153_p4, %p2147_p10 }
  0x7e   : > { %1888 = vmatprep.mubr.msk.f32.mxu0 %vm518_vm0, %v2547_v19 }
 0x129   : > { %v1857_v20 = vpop.f32.mrf.mxu0 }
 0x12a   : > { %798 = vperm.xlu0 %2054, %v1857_v20  }
 0x12b   : > { %v591_v21 = vpop.f32.mrf.mxu0 }
 0x12e   : > { %793 = vperm.xlu0 %2054, %v591_v21  }
 0x139   : > { %v1876_v22 = vpop.f32.mrf.mxu0 }
 0x13b   : > { %v687_v23 = vpop.f32.mrf.mxu0 }
 0x13d   : > { %v1879_v24 = vpop.f32.mrf.mxu0 }
 0x13e   : > { %1880 = vmatprep.subr.mxu0 %v1879_v24 }
 0x13f   : > { %v697_v25 = vpop.f32.mrf.mxu0  ;;  %1881 = vmatpush3.msra.mxu0 %v1879_v24 }
 0x140   : > { %1882 = vmatprep.subr.mxu0 %v697_v25 }
 0x141   : > { %1883 = vmatpush3.msra.mxu0 %v697_v25 }
 0x142   : > { %1884 = vmatprep.subr.mxu0 %v1876_v22 }
 0x143   : > { %1885 = vmatpush3.msra.mxu0 %v1876_v22 }
 0x144   : > { %1886 = vmatprep.subr.mxu0 %v687_v23 }
 0x145   : > { %1887 = vmatpush3.msra.mxu0 %v687_v23 }
 0x146   : > { %1889 = vmatmul.mubr.msk.f32.vlgmr.msra.gmra.mxu0 %vm518_vm0, %v2554_v26  ;;  %1891 = vmatprep.subr.mxu0 %v2251_v27 }
 0x147   : > { %1895 = vmatprep.mubr.msk.f32.mxu0 %vm2252_vm2, %v2251_v27 }
 0x1a5   : > { %v799_v29 = vpop.permute.xlu0 %798 }
 0x1a6   : > { %v802_v33 = vadd.f32 %v1769_v30, %v799_v29 }
 0x1a9   : > { %v794_v32 = vpop.permute.xlu0 %793 }
 0x1aa   : > { %v801_v35 = vadd.f32 %v1768_v31, %v794_v32  ;;  %v1722_v32 = vld [vmem:[%s2609_s2 + $0x1] sm:$0x1] }
 0x206   : > { %v1890_v34 = vpop.f32.mrf.mxu0 }
 0x207   : > { %v804_v36 = vadd.f32 %v1890_v34, %v802_v33 }
 0x208   : > { %v778_v37 = vpop.f32.mrf.mxu0 }
 0x209   : > { %2072 = vtanh.f32 %v804_v36  ;;  %v803_v38 = vadd.f32 %v801_v35, %v778_v37  ;;  %v2064_v37 = vld [vmem:[%s2475_s27 + $0x78] sm:$0xff]  }
 0x20b   : > { %2074 = vtanh.f32 %v803_v38  ;;  %v2065_v38 = vld [vmem:[%s2475_s27 + $0x70] sm:$0xff]  }
 0x216   : > { %v2073_v39 = vpop.eup %2072 }
 0x217   : > { %1892 = vmatpush3.msra.mxu0 %v2073_v39  ;;  %v2066_v39 = vld [vmem:[%s2475_s27 + $0x68] sm:$0xff]  }
 0x218   : > { %v2075_v42 = vpop.eup %2074  ;;  %1893 = vmatprep.subr.mxu0 %v2251_v27 }
 0x219   : > { %1894 = vmatpush3.msra.mxu0 %v2075_v42 }
 0x21a   : > { %1896 = vmatmul.mubr.msk.f32.vlgmr.msra.gmra.mxu0 %vm808_vm3, %v2574_v40  ;;  %1918 = vmatprep.subr.mxu0 %v1703_v41 }
 0x21b   : > { %1919 = vmatpush3.msra.mxu0 %v1703_v41  ;;  %1926 = vmatprep.mubr.msk.f32.mxu0 %vm518_vm0, %v2495_v3  ;;  %v2058_v3 = vld [vmem:[%s2475_s27 + $0x28] sm:$0xff]  }
 0x21c   : > { %1920 = vmatprep.subr.mxu0 %v1702_v43  ;;  %1903 = vmatpush3.bf16.msra.mxu1 %v2058_v3 }
 0x21d   : > { %1921 = vmatpush3.msra.mxu0 %v1702_v43  ;;  %1904 = vmatprep.subr.bf16.mxu1 %v2251_v27 }
 0x21e   : > { %1922 = vmatprep.subr.mxu0 %v1701_v44 }
 0x21f   : > { %1923 = vmatpush3.msra.mxu0 %v1701_v44 }
 0x220   : > { %1924 = vmatprep.subr.mxu0 %v1700_v45  ;;  %1905 = vmatpush3.bf16.msra.mxu1 %v2059_v4 }
 0x221   : > { %1925 = vmatpush3.msra.mxu0 %v1700_v45  ;;  %1906 = vmatprep.subr.bf16.mxu1 %v2251_v27 }
 0x222   : > { %1927 = vmatmul.mubr.msk.f32.vlgmr.msra.gmra.mxu0 %vm518_vm0, %v2504_v6  ;;  %1929 = vmatprep.subr.mxu0 %v1713_v46 }
 0x223   : > { %1930 = vmatpush3.msra.mxu0 %v1713_v46  ;;  %1945 = vmatprep.mubr.msk.f32.mxu0 %vm608_vm1, %v2510_v8 }
 0x224   : > { %1931 = vmatprep.subr.mxu0 %v1712_v47  ;;  %1907 = vmatpush3.bf16.msra.mxu1 %v2060_v10 }
 0x225   : > { %1932 = vmatpush3.msra.mxu0 %v1712_v47  ;;  %1908 = vmatprep.subr.bf16.mxu1 %v2251_v27 }
 0x226   : > { %1933 = vmatprep.subr.mxu0 %v1711_v48 }
 0x227   : > { %1934 = vmatpush3.msra.mxu0 %v1711_v48 }
 0x228   : > { %1935 = vmatprep.subr.mxu0 %v1710_v49  ;;  %1909 = vmatpush3.bf16.msra.mxu1 %v2061_v11 }
 0x229   : > { %1936 = vmatpush3.msra.mxu0 %v1710_v49  ;;  %1910 = vmatprep.subr.bf16.mxu1 %v2251_v27 }
 0x22a   : > { %1937 = vmatprep.subr.mxu0 %v1709_v50 }
 0x22b   : > { %1938 = vmatpush3.msra.mxu0 %v1709_v50  ;;  %v2068_v50 = vld [vmem:[%s2475_s27 + $0x58] sm:$0xff]  }
 0x22c   : > { %1939 = vmatprep.subr.mxu0 %v1708_v51  ;;  %1911 = vmatpush3.bf16.msra.mxu1 %v2062_v12 }
 0x22d   : > { %1940 = vmatpush3.msra.mxu0 %v1708_v51  ;;  %1912 = vmatprep.subr.bf16.mxu1 %v2251_v27  ;;  %v2069_v51 = vld [vmem:[%s2475_s27 + $0x50] sm:$0xff]  }
 0x22e   : > { %1941 = vmatprep.subr.mxu0 %v1707_v52 }
 0x22f   : > { %1942 = vmatpush3.msra.mxu0 %v1707_v52  ;;  %v2070_v52 = vld [vmem:[%s2475_s27 + $0x48] sm:$0xff]  }
 0x230   : > { %1943 = vmatprep.subr.mxu0 %v1706_v53  ;;  %1913 = vmatpush3.bf16.msra.mxu1 %v2063_v13 }
 0x231   : > { %1944 = vmatpush3.msra.mxu0 %v1706_v53  ;;  %1969 = vmatprep.subr.bf16.mxu1 %v2251_v27  ;;  %v2071_v53 = vld [vmem:[%s2475_s27 + $0x40] sm:$0xff]  }
 0x232   : > { %1946 = vmatmul.mubr.msk.f32.vlgmr.msra.gmra.mxu0 %vm608_vm1, %v2526_v16  ;;  %v1773_v16 = vunpack.c.h.bf16 %v1774_v14 }
 0x233   : > { %1948 = vmatprep.mubr.msk.f32.mxu0 %vm608_vm1, %v2531_v17  ;;  %v1772_v17 = vunpack.c.l.bf16 %v1774_v14 }
 0x236   : > { %1949 = vmatmul.mubr.msk.f32.gmra.mxu0 %vm608_vm1, %v2540_v18 }
 0x237   : > { %1959 = vmatprep.mubr.msk.f32.mxu0 %vm518_vm0, %v2547_v19 }
 0x2da   : > { %v878_v55 = vpop.f32.mrf.mxu0 }
 0x2db   : > { %v879_v56 = vadd.f32 %v878_v55, %v807_v54 }
 0x2dc   : > { %v1897_v57 = vpop.f32.mrf.mxu0 }
 0x2dd   : > { %v883_v58 = vsel %vm882_vm4, %v879_v56, -inf }
 0x2de   : > { %884 = vmax.xlane.f32.xlu0 %v883_v58 }
 0x2e2   : > { %v1928_v59 = vpop.f32.mrf.mxu0 }
 0x2e3   : > { %1262 = vperm.xlu1 %2055, %v1928_v59  }
 0x2e4   : > { %v1072_v60 = vpop.f32.mrf.mxu0 }
 0x2e7   : > { %1257 = vperm.xlu1 %2055, %v1072_v60  }
 0x2f2   : > { %v1947_v61 = vpop.f32.mrf.mxu0 }
 0x2f4   : > { %v1156_v62 = vpop.f32.mrf.mxu0 }
 0x2f6   : > { %v1950_v63 = vpop.f32.mrf.mxu0 }
 0x2f7   : > { %1951 = vmatprep.subr.mxu0 %v1950_v63 }
 0x2f8   : > { %v1166_v0 = vpop.f32.mrf.mxu0  ;;  %1952 = vmatpush3.msra.mxu0 %v1950_v63 }
 0x2f9   : > { %1953 = vmatprep.subr.mxu0 %v1166_v0 }
 0x2fa   : > { %1954 = vmatpush3.msra.mxu0 %v1166_v0 }
 0x2fb   : > { %1955 = vmatprep.subr.mxu0 %v1947_v61 }
 0x2fc   : > { %1956 = vmatpush3.msra.mxu0 %v1947_v61 }
 0x2fd   : > { %1957 = vmatprep.subr.mxu0 %v1156_v62 }
 0x2fe   : > { %1958 = vmatpush3.msra.mxu0 %v1156_v62 }
 0x2ff   : > { %1960 = vmatmul.mubr.msk.f32.vlgmr.msra.gmra.mxu0 %vm518_vm0, %v2554_v26  ;;  %1962 = vmatprep.subr.mxu0 %v2251_v27 }
 0x300   : > { %1966 = vmatprep.mubr.msk.f32.mxu0 %vm2252_vm2, %v2251_v27 }
 0x35e   : > { %v1263_v15 = vpop.permute.xlu1 %1262 }
 0x35f   : > { %v1266_v19 = vadd.f32 %v1773_v16, %v1263_v15 }
 0x362   : > { %v1258_v18 = vpop.permute.xlu1 %1257 }
 0x363   : > { %v1265_v21 = vadd.f32 %v1772_v17, %v1258_v18 }
 0x367   : > { %v885_v5 = vpop.xlane.xlu0 %884 }
 0x368   : > { %v886_v6 = vsub.f32 %v879_v56, %v885_v5 }
 0x36a   : > { %v887_v7 = vmul.f32 1.442695, %v886_v6 }
 0x36c   : > { %2076 = vpow2.f32 %v887_v7 }
 0x379   : > { %v2077_v8 = vpop.eup %2076 }
 0x37a   : > { %v889_v9 = vsel %vm882_vm4, %v2077_v8, 0.0 }
 0x37b   : > { %890 = vadd.xlane.f32.xlu0 %v889_v9 }
 0x3bf   : > { %v1961_v20 = vpop.f32.mrf.mxu0 }
 0x3c0   : > { %v1268_v22 = vadd.f32 %v1961_v20, %v1266_v19 }
 0x3c1   : > { %v1241_v23 = vpop.f32.mrf.mxu0 }
 0x3c2   : > { %2078 = vtanh.f32 %v1268_v22  ;;  %v1267_v24 = vadd.f32 %v1265_v21, %v1241_v23 }
 0x3c4   : > { %2080 = vtanh.f32 %v1267_v24 }
 0x3cf   : > { %v2079_v25 = vpop.eup %2078 }
 0x3d0   : > { %1963 = vmatpush3.msra.mxu0 %v2079_v25 }
 0x3d1   : > { %v2081_v26 = vpop.eup %2080  ;;  %1964 = vmatprep.subr.mxu0 %v2251_v27 }
 0x3d2   : > { %1965 = vmatpush3.msra.mxu0 %v2081_v26 }
 0x3d3   : > { %1967 = vmatmul.mubr.msk.f32.vlgmr.msra.gmra.mxu0 %vm808_vm3, %v2574_v40  ;;  %v2067_v40 = vld [vmem:[%s2475_s27 + $0x60] sm:$0xff]   ;;  %s2676_s27 = scalar_lea.hbm %s2767_s10, %s1764_s29 }
 0x404   : > { %v891_v28 = vpop.xlane.xlu0 %890 }
 0x405   : > { %2082 = vrcp.f32 %v891_v28 }
 0x412   : > { %v2083_v29 = vpop.eup %2082 }
 0x413   : > { %v893_v30 = vmul.f32 %v2083_v29, %v2077_v8 }
 0x415   : > { %v895_v31 = vpack.c.bf16 %v893_v30, %v893_v30  ;;  %894 = vst [vmem:[%s2640_s30] sm:$0x1] %v893_v30 }
 0x417   : > { %1915 = vmatmul.mubr.bf16.vlgmr.msra.gmra.mxu1 %v895_v31 }
 0x418   : > { %1985 = vmatprep.mubr.msk.bf16.mxu1 %vm2252_vm2, %v2251_v27  ;;  %1970 = vmatpush3.bf16.msra.mxu1 %v2064_v37 }
 0x419   : > { %1971 = vmatprep.subr.bf16.mxu1 %v2251_v27 }
 0x41c   : > { %1972 = vmatpush3.bf16.msra.mxu1 %v2065_v38 }
 0x41d   : > { %1973 = vmatprep.subr.bf16.mxu1 %v2251_v27 }
 0x420   : > { %1974 = vmatpush3.bf16.msra.mxu1 %v2066_v39 }
 0x421   : > { %1975 = vmatprep.subr.bf16.mxu1 %v2251_v27 }
 0x424   : > { %1976 = vmatpush3.bf16.msra.mxu1 %v2067_v40 }
 0x425   : > { %1977 = vmatprep.subr.bf16.mxu1 %v2251_v27 }
 0x428   : > { %1978 = vmatpush3.bf16.msra.mxu1 %v2068_v50 }
 0x429   : > { %1979 = vmatprep.subr.bf16.mxu1 %v2251_v27 }
 0x42c   : > { %1980 = vmatpush3.bf16.msra.mxu1 %v2069_v51 }
 0x42d   : > { %1981 = vmatprep.subr.bf16.mxu1 %v2251_v27 }
 0x430   : > { %1982 = vmatpush3.bf16.msra.mxu1 %v2070_v52 }
 0x431   : > { %1983 = vmatprep.subr.bf16.mxu1 %v2251_v27 }
 0x434   : > { %1984 = vmatpush3.bf16.msra.mxu1 %v2071_v53 }
 0x493   : > { %v1339_v33 = vpop.f32.mrf.mxu0 }
 0x494   : > { %v1340_v34 = vadd.f32 %v1722_v32, %v1339_v33 }
 0x495   : > { %v1968_v35 = vpop.f32.mrf.mxu0 }
 0x496   : > { %v1343_v36 = vsel %vm882_vm4, %v1340_v34, -inf }
 0x497   : > { %1344 = vmax.xlane.f32.xlu1 %v1343_v36 }
 0x4d7   : > { %v994_v41 = vpop.f32.mrf.mxu1 }
 0x4d8   : > { %1000 = vst [vmem:[%s2655_s15] sm:$0x1] %v994_v41 }
 0x4d9   : > { %v1916_v42 = vpop.f32.mrf.mxu1 }
 0x4db   : > { %v997_v43 = vpop.f32.mrf.mxu1 }
 0x4dd   : > { %v1917_v44 = vpop.f32.mrf.mxu1 }
 0x520   : > { %v1345_v45 = vpop.xlane.xlu1 %1344 }
 0x521   : > { %v1346_v46 = vsub.f32 %v1340_v34, %v1345_v45 }
 0x523   : > { %v1347_v47 = vmul.f32 1.442695, %v1346_v46 }
 0x525   : > { %2084 = vpow2.f32 %v1347_v47 }
 0x532   : > { %v2085_v48 = vpop.eup %2084 }
 0x533   : > { %v1349_v49 = vsel %vm882_vm4, %v2085_v48, 0.0 }
 0x534   : > { %1350 = vadd.xlane.f32.xlu0 %v1349_v49 }
 0x5bd   : > { %v1351_v54 = vpop.xlane.xlu0 %1350 }
 0x5be   : > { %2086 = vrcp.f32 %v1351_v54 }
 0x5cb   : > { %v2087_v55 = vpop.eup %2086 }
 0x5cc   : > { %v1353_v56 = vmul.f32 %v2087_v55, %v2085_v48 }
 0x5ce   : > { %1724 = vst [vmem:[%s2640_s30 + $0x1] sm:$0x1] %v1353_v56  ;;  %v1356_v57 = vpack.c.bf16 %v1353_v56, %v1353_v56 }
 0x5d0   : > { %1986 = vmatmul.mubr.bf16.vlgmr.msra.gmra.mxu1 %v1356_v57 }
 0x5d1   : > { %2157 = shalt.err (!%p2154_p3)
}
 0x5d2   : > { %s2158_s24 = scalar_lea.hbm %s2676_s27, 32  ;;  %s2162_s30 = scalar_lea.hbm %s2767_s10, 64 }
 0x5d3   : > { %p2159_p5 = scmp.ne.s32.totalorder %s2676_s27, %s2158_s24  ;;  %p2163_p8 = scmp.lt.s32.totalorder %s2676_s27, %s2767_s10 }
 0x5d4   : > { %p2164_p6 = scmp.lt.s32.totalorder %s2162_s30, %s2158_s24 }
 0x5d5   : > { %p2160_p11 = pnand %p2159_p5, %p2792_p9 }
 0x5d6   : > { %p2165_p13 = por %p2164_p6, %p2163_p8 }
 0x5d7   : > { %p2161_p12 = pneg %p2160_p11 }
 0x5d9   : > { %p2166_p1 = pnand %p2165_p13, %p2161_p12 }
 0x5db   : > { %2169 = shalt.err (!%p2166_p1)
}
 0x5dc   : > { %s2254_s22 = smov 16   ;;  %s2255_s11 = smov 1  }
 0x5dd   : > { %1994 = dma.vmem_to_hbm [thread:$0]  (%p2792_p9), %s2669_s20, 32, %s2676_s27, %s1470_s26, %s2254_s22, %s2254_s22, %s2255_s11  }
 0x5de   : > { %s1483_s12 = sshll.u32 %s2655_s15, 4  ;;  %s2712_s2 = scalar_lea.hbm %s2766_s9, %s1764_s29  ;;  %s2705_s12 = int_to_ptr.vmem [resolvable:$true] %s1483_s12 }
 0x5df   : > { %s1465_s21 = scalar_lea.sflag [#allocation4], %s2464_s23  ;;  %s2170_s30 = scalar_lea.vmem %s2705_s12, 32 }
 0x5e0   : > { %p2171_p7 = scmp.ne.s32.totalorder %s2705_s12, %s2170_s30  ;;  %s2256_s20 = smov [#allocation7]  }
 0x5e1   : > { %s2174_s27 = sshll.u32 %s2256_s20, 4  ;;  %s2175_s27 = int_to_ptr.vmem [resolvable:$false] %s2174_s27 }
 0x5e2   : > { %p2172_p10 = pnand %p2171_p7, %p2792_p9  ;;  %s2176_s17 = scalar_lea.vmem %s2175_s27, 64 }
 0x5e3   : > { %p2177_p2 = scmp.lt.s32.totalorder %s2705_s12, %s2175_s27  ;;  %p2178_p4 = scmp.lt.s32.totalorder %s2176_s17, %s2170_s30 }
 0x5e4   : > { %p2173_p0 = pneg %p2172_p10 }
 0x5e5   : > { %p2179_p3 = por %p2178_p4, %p2177_p2 }
 0x5e7   : > { %p2180_p5 = pnand %p2179_p3, %p2173_p0 }
 0x690   : > { %v1456_v27 = vpop.f32.mrf.mxu1 }
 0x691   : > { %1749 = vst [vmem:[%s2655_s15 + $0x1] sm:$0x1] %v1456_v27 }
 0x692   : > { %v1987_v58 = vpop.f32.mrf.mxu1 }
 0x693   : > { %2183 = shalt.err (!%p2180_p5)
}
 0x694   : > { %s2184_s15 = scalar_lea.hbm %s2712_s2, 32  ;;  %s2188_s26 = scalar_lea.hbm %s2766_s9, 64 }
 0x695   : > { %p2185_p11 = scmp.ne.s32.totalorder %s2712_s2, %s2184_s15  ;;  %p2189_p6 = scmp.lt.s32.totalorder %s2712_s2, %s2766_s9 }
 0x696   : > { %p2190_p13 = scmp.lt.s32.totalorder %s2188_s26, %s2184_s15 }
 0x697   : > { %p2186_p12 = pnand %p2185_p11, %p2792_p9 }
 0x698   : > { %p2191_p1 = por %p2190_p13, %p2189_p6 }
 0x699   : > { %p2187_p8 = pneg %p2186_p12 }
 0x69b   : > { %p2192_p7 = pnand %p2191_p1, %p2187_p8 }
 0x69d   : > { %2195 = shalt.err (!%p2192_p7)
}
 0x69e   : > { %1993 = dma.vmem_to_hbm [thread:$0]  (%p2792_p9), %s2705_s12, 32, %s2712_s2, %s1465_s21, %s2254_s22, %s2254_s22, %s2255_s11   ;;  %v1459_v59 = vpop.f32.mrf.mxu1 }
 0x6a0   : > { %v1988_v60 = vpop.f32.mrf.mxu1 }
 0x6a1 PF: > { %s2793_s19 = sld [smem:[#allocation17_spill]]  ;;  %s1514_s24 = sand.u32 1, %s2230_s13  }
 0x6a2   : > { %p2795_p0 = scmp.ge.s32.totalorder %s2242_s16, 2  ;;  %s1515_s30 = scalar_lea.sflag [#allocation4], %s1514_s24 }
 0x6a7   : > { %p2794_p10 = scmp.ne.s32.totalorder %s2793_s19, 0 }
 0x6a9   : > { %p2005_p2 = pnand %p2795_p0, %p2794_p10 }
 0x6ab   : > { %p2006_p4 = pneg %p2005_p2 }
 0x6ad   : > { %2221 = dma.done.wait (%p2006_p4), %s1515_s30, 32  }
 0x6ae   : > { %2223 = vsyncadd (%p2006_p4), %s1515_s30, 4294967264  ;;  %s1524_s25 = scalar_lea.sflag [#allocation9], %s1514_s24 }
 0x6af   : > { %2225 = dma.done.wait (%p2006_p4), %s1524_s25, 32  }
 0x6b0   : > { %2227 = vsyncadd (%p2006_p4), %s1524_s25, 4294967264  ;;  %s2796_s16 = sld [smem:[#allocation15_spill]]  ;;  %s2799_s13 = smov %s2234_s14 }
 0x6b1   : > { %s2797_s22 = sld [smem:[#allocation14_spill]] }
 0x6b2   : > { %s2798_s15 = sld [smem:[#allocation16_spill]] }
 0x6b6   : > { %p30_p9 = scmp.ge.s32.totalorder %s2796_s16, 4  }
 0x6b7   : > { %s2800_s14 = smov %s2797_s22 }
 0x6b8   :  { %32 = sbr.rel (!%p30_p9) target bundleno = 11 (0xb), region = 147 }
 0x6bd   :  { %1529 = vsyncpa [#allocation3], 1 }
 0x6be   :  { %1531 = vsyncpa [#allocation3 + $0x1], 1 }
 0x6bf   :  { %1532 = vsyncpa [#allocation6], 1 }
 0x6c0   :  { %1534 = vsyncpa [#allocation6 + $0x1], 1 }
 0x6c1   :  { %1535 = vsyncpa [#allocation4], 1 }
 0x6c2   :  { %1537 = vsyncpa [#allocation4 + $0x1], 1 }
 0x6c3   :  { %1538 = vsyncpa [#allocation9], 1 }
 0x6c4   :  { %1540 = vsyncpa [#allocation9 + $0x1], 1 }

</bundles_post_ra>
